<compile_context>
chip_gen: v7x
topology: tpu7x:2x2x1
jax: 0.10.0
libtpu: 0.0.40
codegen_flags: <defaults>
</compile_context>

<pallas_src>
import functools

import jax
import jax.numpy as jnp
from jax.experimental import pallas as pl
from jax.experimental.pallas import tpu as pltpu


# ----------------------------------------------------------------------------
# Fused kernel: one (C, hw_tile) slab of one batch element per grid step.
# ----------------------------------------------------------------------------
def _coffconv_kernel(x_ref,
                     w1u_ref, b1u_ref, w2u_ref, b2u_ref,
                     w1l_ref, b1l_ref, w2l_ref, b2l_ref,
                     o_ref,
                     sum_ref, sq_ref,
                     *, inv_hw):
    t = pl.program_id(1)

    @pl.when(t == 0)
    def _init():
        sum_ref[...] = jnp.zeros_like(sum_ref)
        sq_ref[...] = jnp.zeros_like(sq_ref)

    # Hot path: accumulate per-channel sum and sum-of-squares for this slab.
    x = x_ref[...].astype(jnp.float32)                      # (C, hw_tile)
    sum_ref[...] += jnp.sum(x, axis=1, keepdims=True)       # (C, 1)
    sq_ref[...] += jnp.sum(x * x, axis=1, keepdims=True)    # (C, 1)

    # Cold path: statistics + both tiny MLP branches, once per batch element.
    @pl.when(t == pl.num_programs(1) - 1)
    def _finalize():
        mean = sum_ref[...] * inv_hw                                   # (C, 1)
        var = jnp.maximum(sq_ref[...] * inv_hw - mean * mean, 0.0)
        stdv = jnp.sqrt(var)                                           # (C, 1)

        def branch(v, w1, b1, w2, b2):
            h = jax.nn.relu(
                jnp.dot(w1, v, preferred_element_type=jnp.float32) + b1)
            o = jax.nn.relu(
                jnp.dot(w2, h, preferred_element_type=jnp.float32) + b2)
            return jax.nn.sigmoid(o)

        upper = branch(mean, w1u_ref[...], b1u_ref[...],
                       w2u_ref[...], b2u_ref[...])
        lower = branch(stdv, w1l_ref[...], b1l_ref[...],
                       w2l_ref[...], b2l_ref[...])
        o_ref[...] = ((upper + lower) * 0.5).astype(o_ref.dtype)


# ----------------------------------------------------------------------------
# Wrapper: layout glue + pallas_call.
# ----------------------------------------------------------------------------
def coff_conv(x_nchw, w1u, b1u, w2u, b2u, w1l, b1l, w2l, b2l,
              *, hw_tile_target=8 * 1024):
    """CoffConv forward. x_nchw: (N, C, H, W)  ->  (N, C, 1, 1) float32."""
    N, C, H, W = x_nchw.shape
    Cmid = w1u.shape[0]
    hw = H * W

    # Lane-dense tiling of the spatial (reduction) axis: multiples of 128.
    lane = 128
    hw_tile = min(hw_tile_target, ((hw + lane - 1) // lane) * lane)
    hw_pad = ((hw + hw_tile - 1) // hw_tile) * hw_tile
    num_t = hw_pad // hw_tile

    x_flat = x_nchw.reshape(N, C, hw)          # free reshape, NCHW layout kept
    if hw_pad != hw:
        # Zero padding does not perturb sum / sum-of-squares; we divide by the
        # true H*W inside the kernel.
        x_flat = jnp.pad(x_flat, ((0, 0), (0, 0), (0, hw_pad - hw)))

    # 1x1-conv weights as dense matrices / column biases (tiny, VMEM-resident).
    f32 = jnp.float32
    w1u_m = w1u[:, :, 0, 0].astype(f32)        # (Cmid, C)
    w2u_m = w2u[:, :, 0, 0].astype(f32)        # (C, Cmid)
    w1l_m = w1l[:, :, 0, 0].astype(f32)
    w2l_m = w2l[:, :, 0, 0].astype(f32)
    b1u_c = b1u.astype(f32)[:, None]           # (Cmid, 1)
    b2u_c = b2u.astype(f32)[:, None]           # (C, 1)
    b1l_c = b1l.astype(f32)[:, None]
    b2l_c = b2l.astype(f32)[:, None]

    kernel = functools.partial(_coffconv_kernel, inv_hw=1.0 / float(hw))
    full = lambda n, t: (0, 0)

    out = pl.pallas_call(
        kernel,
        out_shape=jax.ShapeDtypeStruct((N, C, 1), f32),
        grid=(N, num_t),
        in_specs=[
            pl.BlockSpec((pl.Squeezed(), C, hw_tile), lambda n, t: (n, 0, t)),
            pl.BlockSpec((Cmid, C), full),
            pl.BlockSpec((Cmid, 1), full),
            pl.BlockSpec((C, Cmid), full),
            pl.BlockSpec((C, 1), full),
            pl.BlockSpec((Cmid, C), full),
            pl.BlockSpec((Cmid, 1), full),
            pl.BlockSpec((C, Cmid), full),
            pl.BlockSpec((C, 1), full),
        ],
        out_specs=pl.BlockSpec((pl.Squeezed(), C, 1), lambda n, t: (n, 0, 0)),
        scratch_shapes=[pltpu.VMEM((C, 1), f32),
                        pltpu.VMEM((C, 1), f32)],
        compiler_params=pltpu.CompilerParams(
            dimension_semantics=("parallel", "arbitrary")),
    )(x_flat, w1u_m, b1u_c, w2u_m, b2u_c, w1l_m, b1l_c, w2l_m, b2l_c)

    return out.reshape(N, C, 1, 1)


# ----------------------------------------------------------------------------
# Pure-JAX reference (mirrors the PyTorch module) for verification.
# ----------------------------------------------------------------------------
def _ref_forward(x, w1u, b1u, w2u, b2u, w1l, b1l, w2l, b2l):
    mean = jnp.mean(x, axis=(2, 3))                                   # (N, C)
    var = jnp.mean((x - mean[:, :, None, None]) ** 2, axis=(2, 3))
    stdv = jnp.sqrt(var)                                              # (N, C)

    def branch(v, w1, b1, w2, b2):
        h = jax.nn.relu(v @ w1[:, :, 0, 0].T + b1)
        o = jax.nn.relu(h @ w2[:, :, 0, 0].T + b2)
        return jax.nn.sigmoid(o)

    upper = branch(mean, w1u, b1u, w2u, b2u)
    lower = branch(stdv, w1l, b1l, w2l, b2l)
    return ((upper + lower) * 0.5)[:, :, None, None]


if __name__ == "__main__":
    n_feats = 64
    N, H, W = 2, 16, 16
    Cmid = n_feats // 8

    key = jax.random.PRNGKey(0)
    ks = jax.random.split(key, 9)
    x = jax.random.normal(ks[0], (N, n_feats, H, W), jnp.float32)
    w1u = 0.1 * jax.random.normal(ks[1], (Cmid, n_feats, 1, 1), jnp.float32)
    b1u = 0.1 * jax.random.normal(ks[2], (Cmid,), jnp.float32)
    w2u = 0.1 * jax.random.normal(ks[3], (n_feats, Cmid, 1, 1), jnp.float32)
    b2u = 0.1 * jax.random.normal(ks[4], (n_feats,), jnp.float32)
    w1l = 0.1 * jax.random.normal(ks[5], (Cmid, n_feats, 1, 1), jnp.float32)
    b1l = 0.1 * jax.random.normal(ks[6], (Cmid,), jnp.float32)
    w2l = 0.1 * jax.random.normal(ks[7], (n_feats, Cmid, 1, 1), jnp.float32)
    b2l = 0.1 * jax.random.normal(ks[8], (n_feats,), jnp.float32)

    out = jax.block_until_ready(
        coff_conv(x, w1u, b1u, w2u, b2u, w1l, b1l, w2l, b2l))
    ref = jax.block_until_ready(
        _ref_forward(x, w1u, b1u, w2u, b2u, w1l, b1l, w2l, b2l))

    assert out.shape == ref.shape == (N, n_feats, 1, 1)
    max_err = float(jnp.max(jnp.abs(out - ref)))
    assert max_err < 1e-4, f"max abs err {max_err}"
    print("KERNEL_OK")
</pallas_src>

<mosaic_0001>
module attributes {stable_mosaic.version = 11 : i64} {
  func.func @_coffconv_kernel(%arg0: i32, %arg1: i32, %arg2: memref<1x64x256xf32, #tpu.memory_space<vmem>>, %arg3: memref<8x64xf32, #tpu.memory_space<vmem>>, %arg4: memref<8x1xf32, #tpu.memory_space<vmem>>, %arg5: memref<64x8xf32, #tpu.memory_space<vmem>>, %arg6: memref<64x1xf32, #tpu.memory_space<vmem>>, %arg7: memref<8x64xf32, #tpu.memory_space<vmem>>, %arg8: memref<8x1xf32, #tpu.memory_space<vmem>>, %arg9: memref<64x8xf32, #tpu.memory_space<vmem>>, %arg10: memref<64x1xf32, #tpu.memory_space<vmem>>, %arg11: memref<1x64x1xf32, #tpu.memory_space<vmem>>, %arg12: memref<64x1xf32, #tpu.memory_space<vmem>>, %arg13: memref<64x1xf32, #tpu.memory_space<vmem>>) attributes {dimension_semantics = [#tpu.dimension_semantics<parallel>, #tpu.dimension_semantics<arbitrary>], iteration_bounds = array<i64: 2, 1>, scalar_prefetch = 0 : i64, scratch_operands = 2 : i64, tpu.core_type = #tpu.core_type<tc>, window_params = [{transform_indices = @transform_0, window_bounds = array<i64: 1, 64, 256>}, {pipeline_mode = #tpu.pipeline_mode<synchronous>, transform_indices = @transform_1, window_bounds = array<i64: 8, 64>}, {pipeline_mode = #tpu.pipeline_mode<synchronous>, transform_indices = @transform_2, window_bounds = array<i64: 8, 1>}, {pipeline_mode = #tpu.pipeline_mode<synchronous>, transform_indices = @transform_3, window_bounds = array<i64: 64, 8>}, {pipeline_mode = #tpu.pipeline_mode<synchronous>, transform_indices = @transform_4, window_bounds = array<i64: 64, 1>}, {pipeline_mode = #tpu.pipeline_mode<synchronous>, transform_indices = @transform_5, window_bounds = array<i64: 8, 64>}, {pipeline_mode = #tpu.pipeline_mode<synchronous>, transform_indices = @transform_6, window_bounds = array<i64: 8, 1>}, {pipeline_mode = #tpu.pipeline_mode<synchronous>, transform_indices = @transform_7, window_bounds = array<i64: 64, 8>}, {pipeline_mode = #tpu.pipeline_mode<synchronous>, transform_indices = @transform_8, window_bounds = array<i64: 64, 1>}, {transform_indices = @transform_9, window_bounds = array<i64: 1, 64, 1>}]} {
    %c0_i32 = arith.constant 0 : i32
    %0 = arith.cmpi eq, %arg1, %c0_i32 : i32
    %1 = arith.extui %0 : i1 to i32
    %c0_i32_0 = arith.constant 0 : i32
    %2 = arith.cmpi ne, %1, %c0_i32_0 : i32
    scf.if %2 {
      %cst_14 = arith.constant 0.000000e+00 : f32
      %19 = vector.broadcast %cst_14 : f32 to vector<64x1xf32>
      %c0_15 = arith.constant 0 : index
      %c0_16 = arith.constant 0 : index
      %20 = vector.load %arg12[%c0_15, %c0_16] : memref<64x1xf32, #tpu.memory_space<vmem>>, vector<64x1xf32>
      tpu.vector_store %arg12[%c0_15, %c0_16], %19 {strides = array<i32>} : memref<64x1xf32, #tpu.memory_space<vmem>>, vector<64x1xf32>,
      %cst_17 = arith.constant 0.000000e+00 : f32
      %21 = vector.broadcast %cst_17 : f32 to vector<64x1xf32>
      %c0_18 = arith.constant 0 : index
      %c0_19 = arith.constant 0 : index
      %22 = vector.load %arg13[%c0_18, %c0_19] : memref<64x1xf32, #tpu.memory_space<vmem>>, vector<64x1xf32>
      tpu.vector_store %arg13[%c0_18, %c0_19], %21 {strides = array<i32>} : memref<64x1xf32, #tpu.memory_space<vmem>>, vector<64x1xf32>,
    } else {
    }
    %c0 = arith.constant 0 : index
    %c0_1 = arith.constant 0 : index
    %c0_2 = arith.constant 0 : index
    %3 = vector.load %arg2[%c0, %c0_1, %c0_2] : memref<1x64x256xf32, #tpu.memory_space<vmem>>, vector<1x64x256xf32>
    %4 = vector.shape_cast %3 : vector<1x64x256xf32> to vector<64x256xf32>
    %c0_3 = arith.constant 0 : index
    %c0_4 = arith.constant 0 : index
    %5 = vector.load %arg12[%c0_3, %c0_4] : memref<64x1xf32, #tpu.memory_space<vmem>>, vector<64x1xf32>
    %cst = arith.constant dense<0.000000e+00> : vector<64xf32>
    %6 = vector.multi_reduction <add>, %4, %cst [1] : vector<64x256xf32> to vector<64xf32>
    %7 = vector.shape_cast %6 : vector<64xf32> to vector<64x1xf32>
    %8 = arith.addf %5, %7 : vector<64x1xf32>
    %c0_5 = arith.constant 0 : index
    %c0_6 = arith.constant 0 : index
    %9 = vector.load %arg12[%c0_5, %c0_6] : memref<64x1xf32, #tpu.memory_space<vmem>>, vector<64x1xf32>
    tpu.vector_store %arg12[%c0_5, %c0_6], %8 {strides = array<i32>} : memref<64x1xf32, #tpu.memory_space<vmem>>, vector<64x1xf32>,
    %c0_7 = arith.constant 0 : index
    %c0_8 = arith.constant 0 : index
    %10 = vector.load %arg13[%c0_7, %c0_8] : memref<64x1xf32, #tpu.memory_space<vmem>>, vector<64x1xf32>
    %11 = arith.mulf %4, %4 : vector<64x256xf32>
    %cst_9 = arith.constant dense<0.000000e+00> : vector<64xf32>
    %12 = vector.multi_reduction <add>, %11, %cst_9 [1] : vector<64x256xf32> to vector<64xf32>
    %13 = vector.shape_cast %12 : vector<64xf32> to vector<64x1xf32>
    %14 = arith.addf %10, %13 : vector<64x1xf32>
    %c0_10 = arith.constant 0 : index
    %c0_11 = arith.constant 0 : index
    %15 = vector.load %arg13[%c0_10, %c0_11] : memref<64x1xf32, #tpu.memory_space<vmem>>, vector<64x1xf32>
    tpu.vector_store %arg13[%c0_10, %c0_11], %14 {strides = array<i32>} : memref<64x1xf32, #tpu.memory_space<vmem>>, vector<64x1xf32>,
    %c0_i32_12 = arith.constant 0 : i32
    %16 = arith.cmpi eq, %arg1, %c0_i32_12 : i32
    %17 = arith.extui %16 : i1 to i32
    %c0_i32_13 = arith.constant 0 : i32
    %18 = arith.cmpi ne, %17, %c0_i32_13 : i32
    scf.if %18 {
      %c0_14 = arith.constant 0 : index
      %c0_15 = arith.constant 0 : index
      %19 = vector.load %arg12[%c0_14, %c0_15] : memref<64x1xf32, #tpu.memory_space<vmem>>, vector<64x1xf32>
      %cst_16 = arith.constant 3.906250e-03 : f32
      %20 = vector.broadcast %cst_16 : f32 to vector<64x1xf32>
      %21 = arith.mulf %19, %20 : vector<64x1xf32>
      %c0_17 = arith.constant 0 : index
      %c0_18 = arith.constant 0 : index
      %22 = vector.load %arg13[%c0_17, %c0_18] : memref<64x1xf32, #tpu.memory_space<vmem>>, vector<64x1xf32>
      %cst_19 = arith.constant 3.906250e-03 : f32
      %23 = vector.broadcast %cst_19 : f32 to vector<64x1xf32>
      %24 = arith.mulf %22, %23 : vector<64x1xf32>
      %25 = arith.mulf %21, %21 : vector<64x1xf32>
      %26 = arith.subf %24, %25 : vector<64x1xf32>
      %cst_20 = arith.constant 0.000000e+00 : f32
      %27 = vector.broadcast %cst_20 : f32 to vector<64x1xf32>
      %28 = arith.maximumf %26, %27 : vector<64x1xf32>
      %29 = math.sqrt %28 : vector<64x1xf32>
      %c0_21 = arith.constant 0 : index
      %c0_22 = arith.constant 0 : index
      %30 = vector.load %arg3[%c0_21, %c0_22] : memref<8x64xf32, #tpu.memory_space<vmem>>, vector<8x64xf32>
      %c0_23 = arith.constant 0 : index
      %c0_24 = arith.constant 0 : index
      %31 = vector.load %arg4[%c0_23, %c0_24] : memref<8x1xf32, #tpu.memory_space<vmem>>, vector<8x1xf32>
      %c0_25 = arith.constant 0 : index
      %c0_26 = arith.constant 0 : index
      %32 = vector.load %arg5[%c0_25, %c0_26] : memref<64x8xf32, #tpu.memory_space<vmem>>, vector<64x8xf32>
      %c0_27 = arith.constant 0 : index
      %c0_28 = arith.constant 0 : index
      %33 = vector.load %arg6[%c0_27, %c0_28] : memref<64x1xf32, #tpu.memory_space<vmem>>, vector<64x1xf32>
      %cst_29 = arith.constant dense<0.000000e+00> : vector<8x1xf32>
      %34 = tpu.matmul %30, %21, %cst_29 {dimension_numbers = #tpu.dot_dimension_numbers<[1], [0], [0], [1], [0, 0, 1, 1], [], []>} : vector<8x64xf32>, vector<64x1xf32>, vector<8x1xf32> -> vector<8x1xf32>
      %35 = arith.addf %34, %31 : vector<8x1xf32>
      %cst_30 = arith.constant 0.000000e+00 : f32
      %36 = vector.broadcast %cst_30 : f32 to vector<8x1xf32>
      %37 = arith.maximumf %35, %36 : vector<8x1xf32>
      %cst_31 = arith.constant dense<0.000000e+00> : vector<64x1xf32>
      %38 = tpu.matmul %32, %37, %cst_31 {dimension_numbers = #tpu.dot_dimension_numbers<[1], [0], [0], [1], [0, 0, 1, 1], [], []>} : vector<64x8xf32>, vector<8x1xf32>, vector<64x1xf32> -> vector<64x1xf32>
      %39 = arith.addf %38, %33 : vector<64x1xf32>
      %cst_32 = arith.constant 0.000000e+00 : f32
      %40 = vector.broadcast %cst_32 : f32 to vector<64x1xf32>
      %41 = arith.maximumf %39, %40 : vector<64x1xf32>
      %42 = arith.negf %41 : vector<64x1xf32>
      %43 = math.exp %42 : vector<64x1xf32>
      %cst_33 = arith.constant 1.000000e+00 : f32
      %44 = vector.broadcast %cst_33 : f32 to vector<64x1xf32>
      %45 = arith.addf %44, %43 : vector<64x1xf32>
      %46 = arith.divf %44, %45 : vector<64x1xf32>
      %c0_34 = arith.constant 0 : index
      %c0_35 = arith.constant 0 : index
      %47 = vector.load %arg7[%c0_34, %c0_35] : memref<8x64xf32, #tpu.memory_space<vmem>>, vector<8x64xf32>
      %c0_36 = arith.constant 0 : index
      %c0_37 = arith.constant 0 : index
      %48 = vector.load %arg8[%c0_36, %c0_37] : memref<8x1xf32, #tpu.memory_space<vmem>>, vector<8x1xf32>
      %c0_38 = arith.constant 0 : index
      %c0_39 = arith.constant 0 : index
      %49 = vector.load %arg9[%c0_38, %c0_39] : memref<64x8xf32, #tpu.memory_space<vmem>>, vector<64x8xf32>
      %c0_40 = arith.constant 0 : index
      %c0_41 = arith.constant 0 : index
      %50 = vector.load %arg10[%c0_40, %c0_41] : memref<64x1xf32, #tpu.memory_space<vmem>>, vector<64x1xf32>
      %cst_42 = arith.constant dense<0.000000e+00> : vector<8x1xf32>
      %51 = tpu.matmul %47, %29, %cst_42 {dimension_numbers = #tpu.dot_dimension_numbers<[1], [0], [0], [1], [0, 0, 1, 1], [], []>} : vector<8x64xf32>, vector<64x1xf32>, vector<8x1xf32> -> vector<8x1xf32>
      %52 = arith.addf %51, %48 : vector<8x1xf32>
      %cst_43 = arith.constant 0.000000e+00 : f32
      %53 = vector.broadcast %cst_43 : f32 to vector<8x1xf32>
      %54 = arith.maximumf %52, %53 : vector<8x1xf32>
      %cst_44 = arith.constant dense<0.000000e+00> : vector<64x1xf32>
      %55 = tpu.matmul %49, %54, %cst_44 {dimension_numbers = #tpu.dot_dimension_numbers<[1], [0], [0], [1], [0, 0, 1, 1], [], []>} : vector<64x8xf32>, vector<8x1xf32>, vector<64x1xf32> -> vector<64x1xf32>
      %56 = arith.addf %55, %50 : vector<64x1xf32>
      %cst_45 = arith.constant 0.000000e+00 : f32
      %57 = vector.broadcast %cst_45 : f32 to vector<64x1xf32>
      %58 = arith.maximumf %56, %57 : vector<64x1xf32>
      %59 = arith.negf %58 : vector<64x1xf32>
      %60 = math.exp %59 : vector<64x1xf32>
      %cst_46 = arith.constant 1.000000e+00 : f32
      %61 = vector.broadcast %cst_46 : f32 to vector<64x1xf32>
      %62 = arith.addf %61, %60 : vector<64x1xf32>
      %63 = arith.divf %61, %62 : vector<64x1xf32>
      %64 = arith.addf %46, %63 : vector<64x1xf32>
      %cst_47 = arith.constant 5.000000e-01 : f32
      %65 = vector.broadcast %cst_47 : f32 to vector<64x1xf32>
      %66 = arith.mulf %64, %65 : vector<64x1xf32>
      %c0_48 = arith.constant 0 : index
      %c0_49 = arith.constant 0 : index
      %c0_50 = arith.constant 0 : index
      %67 = vector.load %arg11[%c0_48, %c0_49, %c0_50] : memref<1x64x1xf32, #tpu.memory_space<vmem>>, vector<1x64x1xf32>
      %68 = vector.shape_cast %67 : vector<1x64x1xf32> to vector<64x1xf32>
      %69 = vector.shape_cast %66 : vector<64x1xf32> to vector<1x64x1xf32>
      tpu.vector_store %arg11[%c0_48, %c0_49, %c0_50], %69 {strides = array<i32>} : memref<1x64x1xf32, #tpu.memory_space<vmem>>, vector<1x64x1xf32>,
    } else {
    }
    return
  }
  func.func @transform_0(%arg0: i32, %arg1: i32) -> (i32, i32, i32) {
    %c0_i32 = arith.constant 0 : i32
    %c0_i32_0 = arith.constant 0 : i32
    return %arg0, %c0_i32, %arg1 : i32, i32, i32
  }
  func.func @transform_1(%arg0: i32, %arg1: i32) -> (i32, i32) {
    %c0_i32 = arith.constant 0 : i32
    %c0_i32_0 = arith.constant 0 : i32
    %c0_i32_1 = arith.constant 0 : i32
    return %c0_i32, %c0_i32_0 : i32, i32
  }
  func.func @transform_2(%arg0: i32, %arg1: i32) -> (i32, i32) {
    %c0_i32 = arith.constant 0 : i32
    %c0_i32_0 = arith.constant 0 : i32
    %c0_i32_1 = arith.constant 0 : i32
    return %c0_i32, %c0_i32_0 : i32, i32
  }
  func.func @transform_3(%arg0: i32, %arg1: i32) -> (i32, i32) {
    %c0_i32 = arith.constant 0 : i32
    %c0_i32_0 = arith.constant 0 : i32
    %c0_i32_1 = arith.constant 0 : i32
    return %c0_i32, %c0_i32_0 : i32, i32
  }
  func.func @transform_4(%arg0: i32, %arg1: i32) -> (i32, i32) {
    %c0_i32 = arith.constant 0 : i32
    %c0_i32_0 = arith.constant 0 : i32
    %c0_i32_1 = arith.constant 0 : i32
    return %c0_i32, %c0_i32_0 : i32, i32
  }
  func.func @transform_5(%arg0: i32, %arg1: i32) -> (i32, i32) {
    %c0_i32 = arith.constant 0 : i32
    %c0_i32_0 = arith.constant 0 : i32
    %c0_i32_1 = arith.constant 0 : i32
    return %c0_i32, %c0_i32_0 : i32, i32
  }
  func.func @transform_6(%arg0: i32, %arg1: i32) -> (i32, i32) {
    %c0_i32 = arith.constant 0 : i32
    %c0_i32_0 = arith.constant 0 : i32
    %c0_i32_1 = arith.constant 0 : i32
    return %c0_i32, %c0_i32_0 : i32, i32
  }
  func.func @transform_7(%arg0: i32, %arg1: i32) -> (i32, i32) {
    %c0_i32 = arith.constant 0 : i32
    %c0_i32_0 = arith.constant 0 : i32
    %c0_i32_1 = arith.constant 0 : i32
    return %c0_i32, %c0_i32_0 : i32, i32
  }
  func.func @transform_8(%arg0: i32, %arg1: i32) -> (i32, i32) {
    %c0_i32 = arith.constant 0 : i32
    %c0_i32_0 = arith.constant 0 : i32
    %c0_i32_1 = arith.constant 0 : i32
    return %c0_i32, %c0_i32_0 : i32, i32
  }
  func.func @transform_9(%arg0: i32, %arg1: i32) -> (i32, i32, i32) {
    %c0_i32 = arith.constant 0 : i32
    %c0_i32_0 = arith.constant 0 : i32
    %c0_i32_1 = arith.constant 0 : i32
    return %arg0, %c0_i32, %c0_i32_0 : i32, i32, i32
  }
}

</mosaic_0001>

<bundles_post_ra>
// kernel: tpu_custom_call.1
= control target key start
LH: loop header
LB: loop body
LE: loop exit
PB: predicated region body
PF: predicated region fallthrough
CT: control target
= control target key end

     0   :  { %s1634_s30 = smov 0   ;;  %s1636_s10 = smov 0   ;;  %s1871_s0 = inlined_call_operand.vmem [shape: f32[2,64,256], index: 0, kind: input, shape index: {}]   ;;  %s1872_s1 = inlined_call_operand.vmem [shape: f32[8,64], index: 1, kind: input, shape index: {}]   ;;  %s1873_s2 = inlined_call_operand.vmem [shape: f32[8,1], index: 2, kind: input, shape index: {}]   ;;  %s1874_s3 = inlined_call_operand.vmem [shape: f32[64,8], index: 3, kind: input, shape index: {}]   ;;  %s1875_s4 = inlined_call_operand.vmem [shape: f32[64,1], index: 4, kind: input, shape index: {}]   ;;  %s1876_s5 = inlined_call_operand.vmem [shape: f32[8,64], index: 5, kind: input, shape index: {}]   ;;  %s1877_s6 = inlined_call_operand.vmem [shape: f32[8,1], index: 6, kind: input, shape index: {}]   ;;  %s1878_s7 = inlined_call_operand.vmem [shape: f32[64,8], index: 7, kind: input, shape index: {}]   ;;  %s1879_s8 = inlined_call_operand.vmem [shape: f32[64,1], index: 8, kind: input, shape index: {}]   ;;  %s1880_s9 = inlined_call_operand.vmem [shape: f32[2,64,1], index: 9, kind: output, shape index: {}]  }
   0x1   :  { %s1638_s11 = smov 0  }
   0x2 LB: > { %s31_s12 = sadd.s32 1, %s1575_s10  ;;  %p1279_p0 = scmp.ge.s32.totalorder %s1579_s11, 1  ;;  %s1579_s11 = sphi %s1638_s11, %s19_s11   ;;  %s1575_s10 = sphi %s1636_s10, %s1882_s10   ;;  %s1571_s30 = sphi %s1634_s30, %s1881_s30  }
   0x3   : > { %p33_p1 = scmp.ge.s32.totalorder %s31_s12, 2  ;;  %p306_p2 = scmp.lt.s32.totalorder %s1579_s11, 3 }
   0x5   : > { %s1884_s12 = smov (%p33_p1, %s31_s12), 0  ;;  %p307_p3 = pnand %p1279_p0, %p306_p2 }
   0x6   : > { %p347_p4 = scmp.lt.s32.totalorder (!%p307_p3), %s1571_s30, 1  ;;  %vm365_vm0 = vcmask (!%p307_p3), 7168   ;;  %v1581_v0 = vmov (!%p307_p3), 0.0   ;;  %v1582_v49 = vmov (!%p307_p3), 0.0|0.0   ;;  %vm1583_vm1 = vmmov (!%p307_p3), 0  }
   0x7   : > { %310 = sbr.rel (%p307_p3) target bundleno = 904 (0x388), region = 56  ;;  %368 = vst.msk [vmem:[#allocation2 + $0x10] sm:$0xff] (!%p307_p3), %vm365_vm0, %v1581_v0  ;;  %366 = vst.msk [vmem:[#allocation2] sm:$0xff] (!%p307_p3), %vm365_vm0, %v1581_v0  ;;  %1424 = vmatprep.subr.bf16.mxu0 (!%p307_p3), %v1582_v49  ;;  %1374 = vmatprep.mubr.msk.f32.mxu0 (!%p307_p3), %vm1583_vm1, %v1581_v0  ;;  %vm644_vm2 = vcmask (!%p307_p3), 523264  }
   0x8   : > { %367 = vst.msk [vmem:[#allocation2 + $0x8] sm:$0xff] (!%p307_p3), %vm365_vm0, %v1581_v0  ;;  %369 = vst.msk [vmem:[#allocation2 + $0x18] sm:$0xff] (!%p307_p3), %vm365_vm0, %v1581_v0 }
   0x9   : > { %370 = vst.msk [vmem:[#allocation2 + $0x20] sm:$0xff] (!%p307_p3), %vm365_vm0, %v1581_v0  ;;  %371 = vst.msk [vmem:[#allocation2 + $0x28] sm:$0xff] (!%p307_p3), %vm365_vm0, %v1581_v0 }
   0xa   : > { %372 = vst.msk [vmem:[#allocation2 + $0x30] sm:$0xff] (!%p307_p3), %vm365_vm0, %v1581_v0  ;;  %373 = vst.msk [vmem:[#allocation2 + $0x38] sm:$0xff] (!%p307_p3), %vm365_vm0, %v1581_v0 }
   0xb   : > { %374 = vst.msk [vmem:[#allocation3] sm:$0xff] (!%p307_p3), %vm365_vm0, %v1581_v0  ;;  %375 = vst.msk [vmem:[#allocation3 + $0x8] sm:$0xff] (!%p307_p3), %vm365_vm0, %v1581_v0 }
   0xc   : > { %376 = vst.msk [vmem:[#allocation3 + $0x10] sm:$0xff] (!%p307_p3), %vm365_vm0, %v1581_v0  ;;  %377 = vst.msk [vmem:[#allocation3 + $0x18] sm:$0xff] (!%p307_p3), %vm365_vm0, %v1581_v0 }
   0xd   : > { %378 = vst.msk [vmem:[#allocation3 + $0x20] sm:$0xff] (!%p307_p3), %vm365_vm0, %v1581_v0  ;;  %379 = vst.msk [vmem:[#allocation3 + $0x28] sm:$0xff] (!%p307_p3), %vm365_vm0, %v1581_v0 }
   0xe   : > { %380 = vst.msk [vmem:[#allocation3 + $0x30] sm:$0xff] %vm365_vm0, %v1581_v0  ;;  %381 = vst.msk [vmem:[#allocation3 + $0x38] sm:$0xff] %vm365_vm0, %v1581_v0  ;;  %s1886_s30 = smov (!%p347_p4, %s1571_s30), 1  ;;  %v400_v50 = vld [vmem:[#allocation2 + $0x10] sm:$0xff]  ;;  %v398_v51 = vld [vmem:[#allocation2] sm:$0xff] }
   0xf   : > { %s1320_s13 = sshll.u32 %s1886_s30, 7  ;;  %v401_v56 = vld [vmem:[#allocation2 + $0x18] sm:$0xff]  ;;  %v399_v57 = vld [vmem:[#allocation2 + $0x8] sm:$0xff]  ;;  %s1321_s21 = sshll.u32 %s1886_s30, 6 }
  0x10   : > { %s354_s16 = scalar_lea.vmem %s1871_s0, %s1320_s13  ;;  %v403_v62 = vld [vmem:[#allocation2 + $0x28] sm:$0xff]  ;;  %v402_v63 = vld [vmem:[#allocation2 + $0x20] sm:$0xff]  ;;  %s360_s24 = scalar_lea.vmem %s1880_s9, %s1321_s21 }
  0x11   : > { %v386_v1 = vld [vmem:[%s354_s16 + $0x20] sm:$0xff]  ;;  %v387_v2 = vld [vmem:[%s354_s16 + $0x28] sm:$0xff]  ;;  %v388_v6 = vld [vmem:[%s354_s16 + $0x30] sm:$0xff] }
  0x12   : > { %v382_v3 = vld [vmem:[%s354_s16] sm:$0xff]  ;;  %v412_v4 = vadd.f32 %v387_v2, %v386_v1  ;;  %v383_v5 = vld [vmem:[%s354_s16 + $0x8] sm:$0xff]  ;;  %v389_v7 = vld [vmem:[%s354_s16 + $0x38] sm:$0xff]  ;;  %v461_v30 = vmul.f32 %v388_v6, %v388_v6  ;;  %v459_v32 = vmul.f32 %v386_v1, %v386_v1  ;;  %v460_v33 = vmul.f32 %v387_v2, %v387_v2 }
  0x13   : > { %v406_v8 = vadd.f32 %v383_v5, %v382_v3  ;;  %v384_v9 = vld [vmem:[%s354_s16 + $0x10] sm:$0xff]  ;;  %v385_v10 = vld [vmem:[%s354_s16 + $0x18] sm:$0xff]  ;;  %v415_v11 = vadd.f32 %v389_v7, %v388_v6  ;;  %v390_v15 = vld [vmem:[%s354_s16 + $0x40] sm:$0xff]  ;;  %v455_v26 = vmul.f32 %v382_v3, %v382_v3  ;;  %v456_v27 = vmul.f32 %v383_v5, %v383_v5 }
  0x14   : > { %413 = vadd.xlane.f32.xlu1 %v412_v4  ;;  %v409_v12 = vadd.f32 %v385_v10, %v384_v9  ;;  %v392_v13 = vld [vmem:[%s354_s16 + $0x50] sm:$0xff]  ;;  %v393_v14 = vld [vmem:[%s354_s16 + $0x58] sm:$0xff]  ;;  %v391_v16 = vld [vmem:[%s354_s16 + $0x48] sm:$0xff]  ;;  %v457_v24 = vmul.f32 %v384_v9, %v384_v9  ;;  %v458_v25 = vmul.f32 %v385_v10, %v385_v10  ;;  %v462_v31 = vmul.f32 %v389_v7, %v389_v7 }
  0x15   : > { %407 = vadd.xlane.f32.xlu0 %v406_v8  ;;  %v421_v17 = vadd.f32 %v393_v14, %v392_v13  ;;  %v418_v18 = vadd.f32 %v391_v16, %v390_v15  ;;  %v396_v19 = vld [vmem:[%s354_s16 + $0x70] sm:$0xff]  ;;  %v397_v20 = vld [vmem:[%s354_s16 + $0x78] sm:$0xff]  ;;  %v394_v21 = vld [vmem:[%s354_s16 + $0x60] sm:$0xff]  ;;  %v471_v34 = vadd.f32 %v456_v27, %v455_v26  ;;  %v465_v36 = vmul.f32 %v392_v13, %v392_v13 }
  0x16   : > { %v395_v22 = vld [vmem:[%s354_s16 + $0x68] sm:$0xff]  ;;  %v427_v23 = vadd.f32 %v397_v20, %v396_v19  ;;  %v474_v29 = vadd.f32 %v458_v25, %v457_v24  ;;  %v480_v35 = vadd.f32 %v462_v31, %v461_v30  ;;  %v466_v37 = vmul.f32 %v393_v14, %v393_v14  ;;  %v405_v5 = vld [vmem:[#allocation2 + $0x38] sm:$0xff]  ;;  %v404_v6 = vld [vmem:[#allocation2 + $0x30] sm:$0xff] }
  0x17   : > { %v424_v28 = vadd.f32 %v395_v22, %v394_v21  ;;  %v477_v38 = vadd.f32 %v460_v33, %v459_v32  ;;  %v463_v39 = vmul.f32 %v390_v15, %v390_v15  ;;  %v464_v40 = vmul.f32 %v391_v16, %v391_v16  ;;  %v447_v13 = vld [vmem:[#allocation3] sm:$0xff]  ;;  %v450_v24 = vld [vmem:[#allocation3 + $0x18] sm:$0xff] }
  0x18   : > { %416 = vadd.xlane.f32.xlu1 %v415_v11  ;;  %v486_v41 = vadd.f32 %v466_v37, %v465_v36  ;;  %v469_v42 = vmul.f32 %v396_v19, %v396_v19  ;;  %v470_v43 = vmul.f32 %v397_v20, %v397_v20  ;;  %v467_v45 = vmul.f32 %v394_v21, %v394_v21  ;;  %v452_v37 = vld [vmem:[#allocation3 + $0x28] sm:$0xff] }
  0x19   : > { %410 = vadd.xlane.f32.xlu0 %v409_v12  ;;  %v483_v44 = vadd.f32 %v464_v40, %v463_v39  ;;  %v468_v46 = vmul.f32 %v395_v22, %v395_v22  ;;  %v448_v12 = vld [vmem:[#allocation3 + $0x8] sm:$0xff]  ;;  %v451_v39 = vld [vmem:[#allocation3 + $0x20] sm:$0xff] }
  0x1a   : > { %v492_v47 = vadd.f32 %v470_v43, %v469_v42 }
  0x1b   : > { %v489_v48 = vadd.f32 %v468_v46, %v467_v45 }
  0x1c   : > { %422 = vadd.xlane.f32.xlu1 %v421_v17 }
  0x1d   : > { %419 = vadd.xlane.f32.xlu0 %v418_v18 }
  0x20   : > { %428 = vadd.xlane.f32.xlu1 %v427_v23 }
  0x21   : > { %425 = vadd.xlane.f32.xlu0 %v424_v28  ;;  %v449_v28 = vld [vmem:[#allocation3 + $0x10] sm:$0xff] }
  0x24   : > { %475 = vadd.xlane.f32.xlu1 %v474_v29 }
  0x25   : > { %472 = vadd.xlane.f32.xlu0 %v471_v34 }
  0x28   : > { %481 = vadd.xlane.f32.xlu1 %v480_v35 }
  0x29   : > { %478 = vadd.xlane.f32.xlu0 %v477_v38 }
  0x2c   : > { %487 = vadd.xlane.f32.xlu1 %v486_v41 }
  0x2d   : > { %484 = vadd.xlane.f32.xlu0 %v483_v44 }
  0x30   : > { %493 = vadd.xlane.f32.xlu1 %v492_v47 }
  0x31   : > { %490 = vadd.xlane.f32.xlu0 %v489_v48 }
  0xa1   : > { %v414_v52 = vpop.xlane.xlu1 %413 }
  0xa2   : > { %v432_v53 = vadd.f32 %v414_v52, %v400_v50  ;;  %v408_v54 = vpop.xlane.xlu0 %407  ;;  %v454_v50 = vld [vmem:[#allocation3 + $0x38] sm:$0xff] }
  0xa3   : > { %v430_v55 = vadd.f32 %v408_v54, %v398_v51  ;;  %v453_v54 = vld [vmem:[#allocation3 + $0x30] sm:$0xff] }
  0xa4   : > { %441 = vst.msk [vmem:[#allocation2 + $0x10] sm:$0xff] %vm365_vm0, %v432_v53 }
  0xa5   : > { %439 = vst.msk [vmem:[#allocation2] sm:$0xff] %vm365_vm0, %v430_v55  ;;  %v417_v58 = vpop.xlane.xlu1 %416 }
  0xa6   : > { %v433_v59 = vadd.f32 %v417_v58, %v401_v56  ;;  %v411_v60 = vpop.xlane.xlu0 %410 }
  0xa7   : > { %v431_v61 = vadd.f32 %v411_v60, %v399_v57 }
  0xa8   : > { %442 = vst.msk [vmem:[#allocation2 + $0x18] sm:$0xff] %vm365_vm0, %v433_v59 }
  0xa9   : > { %440 = vst.msk [vmem:[#allocation2 + $0x8] sm:$0xff] %vm365_vm0, %v431_v61  ;;  %v423_v1 = vpop.xlane.xlu1 %422 }
  0xaa   : > { %v435_v2 = vadd.f32 %v423_v1, %v403_v62  ;;  %v420_v3 = vpop.xlane.xlu0 %419 }
  0xab   : > { %v434_v4 = vadd.f32 %v420_v3, %v402_v63  ;;  %v516_v15 = vld [vmem:[#allocation2 + $0x10] sm:$0xff] }
  0xac   : > { %444 = vst.msk [vmem:[#allocation2 + $0x28] sm:$0xff] %vm365_vm0, %v435_v2  ;;  %v514_v10 = vld [vmem:[#allocation2] sm:$0xff]  ;;  %v524_v25 = vmul.f32 0.00390625, %v516_v15 }
  0xad   : > { %443 = vst.msk [vmem:[#allocation2 + $0x20] sm:$0xff] %vm365_vm0, %v434_v4  ;;  %v429_v7 = vpop.xlane.xlu1 %428  ;;  %v522_v18 = vmul.f32 0.00390625, %v514_v10 }
  0xae   : > { %v437_v8 = vadd.f32 %v429_v7, %v405_v5  ;;  %v426_v9 = vpop.xlane.xlu0 %425 }
  0xaf   : > { %v436_v11 = vadd.f32 %v426_v9, %v404_v6  ;;  %v517_v16 = vld [vmem:[#allocation2 + $0x18] sm:$0xff]  ;;  %v546_v56 = vmul.f32 %v522_v18, %v522_v18  ;;  %v626_v9 = vld [vmem:[%s1872_s1] sm:$0xff] }
  0xb0   : > { %446 = vst.msk [vmem:[#allocation2 + $0x38] sm:$0xff] %vm365_vm0, %v437_v8  ;;  %v515_v14 = vld [vmem:[#allocation2 + $0x8] sm:$0xff]  ;;  %v525_v26 = vmul.f32 0.00390625, %v517_v16  ;;  %v548_v8 = vmul.f32 %v524_v25, %v524_v25 }
  0xb1   : > { %445 = vst.msk [vmem:[#allocation2 + $0x30] sm:$0xff] %vm365_vm0, %v436_v11  ;;  %v476_v17 = vpop.xlane.xlu1 %475  ;;  %v523_v19 = vmul.f32 0.00390625, %v515_v14 }
  0xb2   : > { %v496_v20 = vadd.f32 %v476_v17, %v448_v12  ;;  %v473_v21 = vpop.xlane.xlu0 %472  ;;  %v1428_v36 = vpack.c.bf16 %v525_v26, %v524_v25  ;;  %v549_v5 = vmul.f32 %v525_v26, %v525_v26 }
  0xb3   : > { %v495_v22 = vadd.f32 %v473_v21, %v447_v13  ;;  %v1425_v23 = vpack.c.bf16 %v523_v19, %v522_v18  ;;  %v519_v27 = vld [vmem:[#allocation2 + $0x28] sm:$0xff]  ;;  %v547_v53 = vmul.f32 %v523_v19, %v523_v19 }
  0xb4   : > { %504 = vst.msk [vmem:[#allocation3 + $0x8] sm:$0xff] %vm365_vm0, %v496_v20  ;;  %v518_v29 = vld [vmem:[#allocation2 + $0x20] sm:$0xff]  ;;  %v527_v32 = vmul.f32 0.00390625, %v519_v27 }
  0xb5   : > { %503 = vst.msk [vmem:[#allocation3] sm:$0xff] %vm365_vm0, %v495_v22  ;;  %1426 = vmatpush3.bf16.msra.mxu0 %v1425_v23  ;;  %v482_v30 = vpop.xlane.xlu1 %481  ;;  %v1704_v31 = vmul.f32 0.00390625, %v518_v29 }
  0xb6   : > { %v498_v33 = vadd.f32 %v482_v30, %v450_v24  ;;  %v479_v34 = vpop.xlane.xlu0 %478  ;;  %1427 = vmatprep.subr.bf16.mxu0 %v1582_v49  ;;  %v551_v16 = vmul.f32 %v527_v32, %v527_v32 }
  0xb7   : > { %v497_v35 = vadd.f32 %v479_v34, %v449_v28  ;;  %v521_v38 = vld [vmem:[#allocation2 + $0x38] sm:$0xff]  ;;  %v1431_v42 = vpack.c.bf16 %v527_v32, %v1704_v31  ;;  %v550_v19 = vmul.f32 %v1704_v31, %v1704_v31 }
  0xb8   : > { %506 = vst.msk [vmem:[#allocation3 + $0x18] sm:$0xff] %vm365_vm0, %v498_v33  ;;  %v520_v40 = vld [vmem:[#allocation2 + $0x30] sm:$0xff]  ;;  %v529_v44 = vmul.f32 0.00390625, %v521_v38 }
  0xb9   : > { %505 = vst.msk [vmem:[#allocation3 + $0x10] sm:$0xff] %vm365_vm0, %v497_v35  ;;  %1429 = vmatpush3.bf16.msra.mxu0 %v1428_v36  ;;  %v488_v41 = vpop.xlane.xlu1 %487  ;;  %v528_v43 = vmul.f32 0.00390625, %v520_v40 }
  0xba   : > { %v500_v45 = vadd.f32 %v488_v41, %v452_v37  ;;  %v485_v46 = vpop.xlane.xlu0 %484  ;;  %1430 = vmatprep.subr.bf16.mxu0 %v1582_v49  ;;  %v553_v26 = vmul.f32 %v529_v44, %v529_v44 }
  0xbb   : > { %v531_v47 = vld [vmem:[#allocation3 + $0x8] sm:$0xff]  ;;  %v499_v48 = vadd.f32 %v485_v46, %v451_v39  ;;  %v1434_v58 = vpack.c.bf16 %v529_v44, %v528_v43  ;;  %v552_v29 = vmul.f32 %v528_v43, %v528_v43 }
  0xbc   : > { %v530_v51 = vld [vmem:[#allocation3] sm:$0xff]  ;;  %v539_v52 = vmul.f32 0.00390625, %v531_v47  ;;  %508 = vst.msk [vmem:[#allocation3 + $0x28] sm:$0xff] %vm365_vm0, %v500_v45 }
  0xbd   : > { %v538_v55 = vmul.f32 0.00390625, %v530_v51  ;;  %507 = vst.msk [vmem:[#allocation3 + $0x20] sm:$0xff] %vm365_vm0, %v499_v48  ;;  %1432 = vmatpush3.bf16.msra.mxu0 %v1431_v42  ;;  %v494_v57 = vpop.xlane.xlu1 %493 }
  0xbe   : > { %v555_v59 = vsub.f32 %v539_v52, %v547_v53  ;;  %v502_v60 = vadd.f32 %v494_v57, %v454_v50  ;;  %v491_v61 = vpop.xlane.xlu0 %490  ;;  %1433 = vmatprep.subr.bf16.mxu0 %v1582_v49 }
  0xbf   : > { %v554_v62 = vsub.f32 %v538_v55, %v546_v56  ;;  %v533_v63 = vld [vmem:[#allocation3 + $0x18] sm:$0xff]  ;;  %v501_v1 = vadd.f32 %v491_v61, %v453_v54 }
  0xc0   : > { %v563_v2 = vmax.f32 %v555_v59, 0.0  ;;  %v532_v3 = vld [vmem:[#allocation3 + $0x10] sm:$0xff]  ;;  %v541_v4 = vmul.f32 0.00390625, %v533_v63  ;;  %510 = vst.msk [vmem:[#allocation3 + $0x38] sm:$0xff] %vm365_vm0, %v502_v60 }
  0xc1   : > { %v562_v6 = vmax.f32 %v554_v62, 0.0  ;;  %v540_v7 = vmul.f32 0.00390625, %v532_v3  ;;  %509 = vst.msk [vmem:[#allocation3 + $0x30] sm:$0xff] %vm365_vm0, %v501_v1  ;;  %1435 = vmatpush3.bf16.msra.mxu0 %v1434_v58 }
  0xc2   : > { %1477 = vrsqrt.f32 %v563_v2  ;;  %v557_v10 = vsub.f32 %v541_v4, %v549_v5  ;;  %vm579_vm3 = vcmp.eq.f32.partialorder %v563_v2, inf  ;;  %vm581_vm4 = vcmp.eq.f32.partialorder %v563_v2, 0.0 }
  0xc3   : > { %1479 = vrsqrt.f32 %v562_v6  ;;  %v556_v11 = vsub.f32 %v540_v7, %v548_v8  ;;  %v535_v12 = vld [vmem:[#allocation3 + $0x28] sm:$0xff]  ;;  %v582_v38 = vand.u32 2147483648, %v563_v2  ;;  %vm572_vm5 = vcmp.eq.f32.partialorder %v562_v6, inf }
  0xc4   : > { %v565_v13 = vmax.f32 %v557_v10, 0.0  ;;  %v534_v14 = vld [vmem:[#allocation3 + $0x20] sm:$0xff]  ;;  %v543_v15 = vmul.f32 0.00390625, %v535_v12  ;;  %1375 = vmatmul.mubr.msk.f32.vlgmr.msra.gmra.mrb[0].mxu0 %vm644_vm2, %v626_v9  ;;  %v575_v39 = vand.u32 2147483648, %v562_v6  ;;  %vm574_vm6 = vcmp.eq.f32.partialorder %v562_v6, 0.0 }
  0xc5   : > { %v564_v17 = vmax.f32 %v556_v11, 0.0  ;;  %v542_v18 = vmul.f32 0.00390625, %v534_v14 }
  0xc6   : > { %v559_v20 = vsub.f32 %v543_v15, %v551_v16  ;;  %1481 = vrsqrt.f32 %v565_v13  ;;  %vm593_vm7 = vcmp.eq.f32.partialorder %v565_v13, inf  ;;  %v596_v50 = vand.u32 2147483648, %v565_v13  ;;  %v628_v16 = vld [vmem:[%s1874_s3] sm:$0xff] }
  0xc7   : > { %v558_v21 = vsub.f32 %v542_v18, %v550_v19  ;;  %v537_v22 = vld [vmem:[#allocation3 + $0x38] sm:$0xff]  ;;  %1483 = vrsqrt.f32 %v564_v17  ;;  %vm586_vm8 = vcmp.eq.f32.partialorder %v564_v17, inf  ;;  %v589_v51 = vand.u32 2147483648, %v564_v17 }
  0xc8   : > { %v567_v23 = vmax.f32 %v559_v20, 0.0  ;;  %v536_v24 = vld [vmem:[#allocation3 + $0x30] sm:$0xff]  ;;  %v545_v25 = vmul.f32 0.00390625, %v537_v22  ;;  %vm595_vm9 = vcmp.eq.f32.partialorder %v565_v13, 0.0  ;;  %vm588_vm10 = vcmp.eq.f32.partialorder %v564_v17, 0.0  ;;  %v629_v22 = vld [vmem:[%s1874_s3 + $0x8] sm:$0xff] }
  0xc9   : > { %v566_v27 = vmax.f32 %v558_v21, 0.0  ;;  %v544_v28 = vmul.f32 0.00390625, %v536_v24  ;;  %v631_v24 = vld [vmem:[%s1874_s3 + $0x18] sm:$0xff] }
  0xca   : > { %v561_v30 = vsub.f32 %v545_v25, %v553_v26  ;;  %1485 = vrsqrt.f32 %v567_v23  ;;  %vm607_vm11 = vcmp.eq.f32.partialorder %v567_v23, inf  ;;  %v610_v61 = vand.u32 2147483648, %v567_v23  ;;  %v632_v25 = vld [vmem:[%s1874_s3 + $0x20] sm:$0xff]  ;;  %v633_v26 = vld [vmem:[%s1874_s3 + $0x28] sm:$0xff] }
  0xcb   : > { %v560_v32 = vsub.f32 %v544_v28, %v552_v29  ;;  %1487 = vrsqrt.f32 %v566_v27  ;;  %vm600_vm12 = vcmp.eq.f32.partialorder %v566_v27, inf  ;;  %v603_v62 = vand.u32 2147483648, %v566_v27  ;;  %v635_v28 = vld [vmem:[%s1874_s3 + $0x38] sm:$0xff]  ;;  %v905_v29 = vld [vmem:[%s1876_s5] sm:$0xff] }
  0xcc   : > { %v1478_v33 = vpop.eup %1477  ;;  %v569_v34 = vmax.f32 %v561_v30, 0.0  ;;  %vm609_vm13 = vcmp.eq.f32.partialorder %v567_v23, 0.0  ;;  %vm602_vm14 = vcmp.eq.f32.partialorder %v566_v27, 0.0  ;;  %v907_v30 = vld [vmem:[%s1878_s7] sm:$0xff] }
  0xcd   : > { %v1480_v35 = vpop.eup %1479  ;;  %v568_v31 = vmax.f32 %v560_v32, 0.0  ;;  %v578_v36 = vmul.f32 %v1478_v33, %v563_v2 }
  0xce   : > { %v571_v37 = vmul.f32 %v1480_v35, %v562_v6  ;;  %1489 = vrsqrt.f32 %v569_v34  ;;  %vm621_vm15 = vcmp.eq.f32.partialorder %v569_v34, inf  ;;  %v624_v9 = vand.u32 2147483648, %v569_v34 }
  0xcf   : > { %v580_v40 = vsel %vm579_vm3, %v563_v2, %v578_v36  ;;  %1491 = vrsqrt.f32 %v568_v31  ;;  %vm614_vm3 = vcmp.eq.f32.partialorder %v568_v31, inf  ;;  %v617_v10 = vand.u32 2147483648, %v568_v31 }
  0xd0   : > { %v1482_v41 = vpop.eup %1481  ;;  %v573_v42 = vsel %vm572_vm5, %v562_v6, %v571_v37  ;;  %v583_v43 = vsel %vm581_vm4, %v582_v38, %v580_v40  ;;  %vm623_vm4 = vcmp.eq.f32.partialorder %v569_v34, 0.0  ;;  %vm616_vm5 = vcmp.eq.f32.partialorder %v568_v31, 0.0  ;;  %v906_v38 = vld [vmem:[%s1877_s6] sm:$0xff] }
  0xd1   : > { %v1484_v44 = vpop.eup %1483  ;;  %v576_v45 = vsel %vm574_vm6, %v575_v39, %v573_v42  ;;  %v592_v46 = vmul.f32 %v1482_v41, %v565_v13  ;;  %vm719_vm6 = vcmask 64512  }
  0xd2   : > { %v1437_v47 = vpack.c.bf16 %v583_v43, %v576_v45  ;;  %v585_v48 = vmul.f32 %v1484_v44, %v564_v17  ;;  %1379 = vmatprep.mubr.msk.f32.mxu1 %vm719_vm6, %v628_v16  ;;  %1412 = vmatprep.mubr.msk.f32.mxu0 %vm719_vm6, %v907_v30  ;;  %v908_v43 = vld [vmem:[%s1878_s7 + $0x8] sm:$0xff]  ;;  %v914_v44 = vld [vmem:[%s1878_s7 + $0x38] sm:$0xff]  ;;  %v909_v45 = vld [vmem:[%s1878_s7 + $0x10] sm:$0xff] }
  0xd3   : > { %v594_v52 = vsel %vm593_vm7, %v565_v13, %v592_v46  ;;  %v910_v46 = vld [vmem:[%s1878_s7 + $0x18] sm:$0xff] }
  0xd4   : > { %v1486_v53 = vpop.eup %1485  ;;  %v587_v54 = vsel %vm586_vm8, %v564_v17, %v585_v48  ;;  %v597_v55 = vsel %vm595_vm9, %v596_v50, %v594_v52  ;;  %v627_v17 = vld [vmem:[%s1873_s2] sm:$0xff]  ;;  %v912_v48 = vld [vmem:[%s1878_s7 + $0x28] sm:$0xff] }
  0xd5   : > { %v1488_v56 = vpop.eup %1487  ;;  %v590_v57 = vsel %vm588_vm10, %v589_v51, %v587_v54  ;;  %v606_v58 = vmul.f32 %v1486_v53, %v567_v23  ;;  %v637_v50 = vld [vmem:[%s1875_s4 + $0x8] sm:$0xff]  ;;  %v636_v53 = vld [vmem:[%s1875_s4] sm:$0xff]  ;;  %v639_v54 = vld [vmem:[%s1875_s4 + $0x18] sm:$0xff] }
  0xd6   : > { %v1440_v59 = vpack.c.bf16 %v597_v55, %v590_v57  ;;  %v599_v60 = vmul.f32 %v1488_v56, %v566_v27 }
  0xd7   : > { %v608_v63 = vsel %vm607_vm11, %v567_v23, %v606_v58  ;;  %v630_v23 = vld [vmem:[%s1874_s3 + $0x10] sm:$0xff] }
  0xd8   : > { %v1490_v1 = vpop.eup %1489  ;;  %v601_v2 = vsel %vm600_vm12, %v566_v27, %v599_v60  ;;  %v611_v3 = vsel %vm609_vm13, %v610_v61, %v608_v63  ;;  %v634_v27 = vld [vmem:[%s1874_s3 + $0x30] sm:$0xff] }
  0xd9   : > { %v1492_v4 = vpop.eup %1491  ;;  %v604_v5 = vsel %vm602_vm14, %v603_v62, %v601_v2  ;;  %v620_v6 = vmul.f32 %v1490_v1, %v569_v34  ;;  %v638_v58 = vld [vmem:[%s1875_s4 + $0x10] sm:$0xff]  ;;  %v641_v1 = vld [vmem:[%s1875_s4 + $0x28] sm:$0xff] }
  0xda   : > { %v1443_v7 = vpack.c.bf16 %v611_v3, %v604_v5  ;;  %v613_v8 = vmul.f32 %v1492_v4, %v568_v31  ;;  %v642_v60 = vld [vmem:[%s1875_s4 + $0x30] sm:$0xff]  ;;  %v640_v3 = vld [vmem:[%s1875_s4 + $0x20] sm:$0xff] }
  0xdb   : > { %v622_v11 = vsel %vm621_vm15, %v569_v34, %v620_v6 }
  0xdc   : > { %v615_v12 = vsel %vm614_vm3, %v568_v31, %v613_v8  ;;  %v625_v13 = vsel %vm623_vm4, %v624_v9, %v622_v11 }
  0xdd   : > { %v618_v14 = vsel %vm616_vm5, %v617_v10, %v615_v12 }
  0xde   : > { %v1446_v15 = vpack.c.bf16 %v625_v13, %v618_v14 }
 0x197   : > { %v714_v18 = vpop.f32.mrb[0].mxu0 }
 0x198   : > { %v715_v19 = vadd.f32 %v714_v18, %v627_v17  ;;  %v1376_v20 = vpop.f32.mrb[1].mxu0  ;;  %v916_v17 = vld [vmem:[%s1879_s8 + $0x8] sm:$0xff]  ;;  %v922_v18 = vld [vmem:[%s1879_s8 + $0x38] sm:$0xff] }
 0x199   : > { %v915_v20 = vld [vmem:[%s1879_s8] sm:$0xff] }
 0x19a   : > { %v718_v21 = vmax.f32 %v715_v19, 0.0 }
 0x19c   : > { %1377 = vmatprep.subr.mxu1 %v718_v21 }
 0x19d   : > { %1378 = vmatpush3.msra.mxu1 %v718_v21  ;;  %v921_v21 = vld [vmem:[%s1879_s8 + $0x30] sm:$0xff] }
 0x19e   : > { %1380 = vmatmul.mubr.msk.f32.vlgmr.msra.gmra.mrb[0].mxu1 %vm719_vm6, %v629_v22  ;;  %1436 = vmatprep.subr.bf16.mxu1 %v1582_v49 }
 0x19f   : > { %1438 = vmatpush3.bf16.msra.mxu1 %v1437_v47  ;;  %1382 = vmatprep.mubr.msk.f32.mxu1 %vm719_vm6, %v630_v23  ;;  %v911_v47 = vld [vmem:[%s1878_s7 + $0x20] sm:$0xff] }
 0x1a0   : > { %1439 = vmatprep.subr.bf16.mxu1 %v1582_v49 }
 0x1a2   : > { %1383 = vmatmul.mubr.msk.f32.gmra.mrb[2].mxu1 %vm719_vm6, %v631_v24 }
 0x1a3   : > { %1441 = vmatpush3.bf16.msra.mxu1 %v1440_v59  ;;  %1385 = vmatprep.mubr.msk.f32.mxu1 %vm719_vm6, %v632_v25  ;;  %v643_v59 = vld [vmem:[%s1875_s4 + $0x38] sm:$0xff] }
 0x1a4   : > { %1442 = vmatprep.subr.bf16.mxu1 %v1582_v49 }
 0x1a6   : > { %1386 = vmatmul.mubr.msk.f32.gmra.mrb[4].mxu1 %vm719_vm6, %v633_v26 }
 0x1a7   : > { %1444 = vmatpush3.bf16.msra.mxu1 %v1443_v7  ;;  %1388 = vmatprep.mubr.msk.f32.mxu1 %vm719_vm6, %v634_v27 }
 0x1a8   : > { %1445 = vmatprep.subr.bf16.mxu1 %v1582_v49  ;;  %v913_v49 = vld [vmem:[%s1878_s7 + $0x30] sm:$0xff] }
 0x1aa   : > { %1389 = vmatmul.mubr.msk.f32.gmra.mrb[6].mxu1 %vm719_vm6, %v635_v28 }
 0x1ab   : > { %1447 = vmatpush3.bf16.msra.mxu1 %v1446_v15  ;;  %1407 = vmatprep.mubr.msk.f32.mxu1 %vm1583_vm1, %v1581_v0 }
 0x1ae   : > { %1408 = vmatmul.mubr.msk.f32.vlgmr.msra.gmra.mrb[8].mxu1 %vm644_vm2, %v905_v29 }
 0x1af   : > { %1421 = vmatprep.mubr.msk.f32.mxu1 %vm719_vm6, %v913_v49 }
 0x271   : > { %v1381_v32 = vpop.f32.mrb[0].mxu1 }
 0x272   : > { %v810_v0 = vpop.f32.mrb[1].mxu1  ;;  %v816_v51 = vadd.f32 %v1381_v32, %v637_v50  ;;  %v919_v50 = vld [vmem:[%s1879_s8 + $0x20] sm:$0xff] }
 0x273   : > { %v811_v55 = vadd.f32 %v810_v0, %v636_v53  ;;  %v918_v0 = vld [vmem:[%s1879_s8 + $0x18] sm:$0xff] }
 0x274   : > { %v850_v52 = vmax.f32 %v816_v51, 0.0 }
 0x275   : > { %v1384_v33 = vpop.f32.mrb[2].mxu1  ;;  %v849_v61 = vmax.f32 %v811_v55, 0.0 }
 0x276   : > { %v820_v34 = vpop.f32.mrb[3].mxu1  ;;  %v1294_v56 = vmul.f32 -1.442695, %v850_v52  ;;  %v826_v57 = vadd.f32 %v1384_v33, %v639_v54 }
 0x277   : > { %v821_v62 = vadd.f32 %v820_v34, %v638_v58  ;;  %v1293_v5 = vmul.f32 -1.442695, %v849_v61 }
 0x278   : > { %1493 = vpow2.f32 %v1294_v56  ;;  %v852_v63 = vmax.f32 %v826_v57, 0.0 }
 0x279   : > { %v1387_v35 = vpop.f32.mrb[4].mxu1  ;;  %v851_v6 = vmax.f32 %v821_v62, 0.0  ;;  %1495 = vpow2.f32 %v1293_v5 }
 0x27a   : > { %v830_v31 = vpop.f32.mrb[5].mxu1  ;;  %v836_v7 = vadd.f32 %v1387_v35, %v641_v1  ;;  %v1296_v8 = vmul.f32 -1.442695, %v852_v63  ;;  %v917_v35 = vld [vmem:[%s1879_s8 + $0x10] sm:$0xff] }
 0x27b   : > { %v831_v9 = vadd.f32 %v830_v31, %v640_v3  ;;  %v1295_v12 = vmul.f32 -1.442695, %v851_v6 }
 0x27c   : > { %v854_v13 = vmax.f32 %v836_v7, 0.0  ;;  %1497 = vpow2.f32 %v1296_v8 }
 0x27d   : > { %v1390_v36 = vpop.f32.mrb[6].mxu1  ;;  %v853_v14 = vmax.f32 %v831_v9, 0.0  ;;  %1499 = vpow2.f32 %v1295_v12 }
 0x27e   : > { %v840_v37 = vpop.f32.mrb[7].mxu1  ;;  %v846_v2 = vadd.f32 %v1390_v36, %v643_v59  ;;  %v1298_v22 = vmul.f32 -1.442695, %v854_v13 }
 0x27f   : > { %v841_v4 = vadd.f32 %v840_v37, %v642_v60  ;;  %v1297_v25 = vmul.f32 -1.442695, %v853_v14 }
 0x280   : > { %v856_v10 = vmax.f32 %v846_v2, 0.0 }
 0x281   : > { %v992_v39 = vpop.f32.mrb[8].mxu1  ;;  %v855_v11 = vmax.f32 %v841_v4, 0.0 }
 0x282   : > { %v993_v40 = vadd.f32 %v992_v39, %v906_v38  ;;  %v1409_v41 = vpop.f32.mrb[9].mxu1  ;;  %v1300_v15 = vmul.f32 -1.442695, %v856_v10  ;;  %v1494_v19 = vpop.eup %1493 }
 0x283   : > { %v1299_v16 = vmul.f32 -1.442695, %v855_v11  ;;  %v882_v30 = vadd.f32 1.0, %v1494_v19 }
 0x284   : > { %v996_v42 = vmax.f32 %v993_v40, 0.0  ;;  %1501 = vpow2.f32 %v1300_v15 }
 0x285   : > { %1503 = vpow2.f32 %v1299_v16 }
 0x286   : > { %1410 = vmatprep.subr.mxu0 %v996_v42  ;;  %1448 = vmatprep.subr.mxu1 %v996_v42  ;;  %1505 = vpow2.f32 %v1298_v22 }
 0x287   : > { %1411 = vmatpush3.msra.mxu0 %v996_v42  ;;  %1449 = vmatpush3.msra.mxu1 %v996_v42  ;;  %1507 = vpow2.f32 %v1297_v25  ;;  %v1496_v42 = vpop.eup %1495 }
 0x288   : > { %1413 = vmatmul.mubr.msk.f32.vlgmr.msra.gmra.mrb[2].mxu0 %vm719_vm6, %v908_v43  ;;  %1422 = vmatmul.mubr.msk.f32.vlgmr.msra.gmra.mrb[10].mxu1 %vm719_vm6, %v914_v44  ;;  %1509 = vrcp.f32 %v882_v30  ;;  %v881_v53 = vadd.f32 1.0, %v1496_v42 }
 0x289   : > { %1415 = vmatprep.mubr.msk.f32.mxu0 %vm719_vm6, %v909_v45 }
 0x28c   : > { %1416 = vmatmul.mubr.msk.f32.gmra.mrb[4].mxu0 %vm719_vm6, %v910_v46  ;;  %v920_v46 = vld [vmem:[%s1879_s8 + $0x28] sm:$0xff] }
 0x28d   : > { %1418 = vmatprep.mubr.msk.f32.mxu0 %vm719_vm6, %v911_v47  ;;  %v1498_v47 = vpop.eup %1497 }
 0x28e   : > { %v1500_v57 = vpop.eup %1499  ;;  %v884_v58 = vadd.f32 1.0, %v1498_v47 }
 0x28f   : > { %v1502_v61 = vpop.eup %1501  ;;  %v883_v2 = vadd.f32 1.0, %v1500_v57 }
 0x290   : > { %1419 = vmatmul.mubr.msk.f32.gmra.mrb[6].mxu0 %vm719_vm6, %v912_v48  ;;  %v1504_v63 = vpop.eup %1503  ;;  %v888_v5 = vadd.f32 1.0, %v1502_v61 }
 0x291   : > { %v1506_v4 = vpop.eup %1505  ;;  %v887_v8 = vadd.f32 1.0, %v1504_v63 }
 0x292   : > { %v1508_v7 = vpop.eup %1507 }
 0x293   : > { %v1510_v9 = vpop.eup %1509 }
 0x35b   : > { %v1414_v23 = vpop.f32.mrb[2].mxu0  ;;  %v1423_v24 = vpop.f32.mrb[10].mxu1 }
 0x35c   : > { %v1093_v26 = vadd.f32 %v1414_v23, %v916_v17  ;;  %v1123_v27 = vadd.f32 %v1423_v24, %v922_v18  ;;  %v1087_v28 = vpop.f32.mrb[3].mxu0  ;;  %v1117_v29 = vpop.f32.mrb[11].mxu1  ;;  %v885_v23 = vadd.f32 1.0, %v1508_v7 }
 0x35d   : > { %v1088_v49 = vadd.f32 %v1087_v28, %v915_v20  ;;  %v1118_v32 = vadd.f32 %v1117_v29, %v921_v21  ;;  %v886_v20 = vadd.f32 1.0, %v1506_v4 }
 0x35e   : > { %v1127_v33 = vmax.f32 %v1093_v26, 0.0  ;;  %v1133_v34 = vmax.f32 %v1123_v27, 0.0 }
 0x35f   : > { %v1126_v31 = vmax.f32 %v1088_v49, 0.0  ;;  %v1132_v36 = vmax.f32 %v1118_v32, 0.0  ;;  %v1417_v37 = vpop.f32.mrb[4].mxu0 }
 0x360   : > { %v1311_v38 = vmul.f32 -1.442695, %v1127_v33  ;;  %v1317_v39 = vmul.f32 -1.442695, %v1133_v34  ;;  %v1103_v40 = vadd.f32 %v1417_v37, %v918_v0  ;;  %v1097_v41 = vpop.f32.mrb[5].mxu0 }
 0x361   : > { %v1310_v43 = vmul.f32 -1.442695, %v1126_v31  ;;  %v1316_v44 = vmul.f32 -1.442695, %v1132_v36  ;;  %v1098_v45 = vadd.f32 %v1097_v41, %v917_v35 }
 0x362   : > { %1511 = vpow2.f32 %v1311_v38  ;;  %v1129_v48 = vmax.f32 %v1103_v40, 0.0 }
 0x363   : > { %1513 = vpow2.f32 %v1317_v39  ;;  %v1128_v51 = vmax.f32 %v1098_v45, 0.0  ;;  %v1420_v52 = vpop.f32.mrb[6].mxu0 }
 0x364   : > { %1515 = vpow2.f32 %v1310_v43  ;;  %v1313_v54 = vmul.f32 -1.442695, %v1129_v48  ;;  %v1113_v55 = vadd.f32 %v1420_v52, %v920_v46  ;;  %v1107_v56 = vpop.f32.mrb[7].mxu0 }
 0x365   : > { %1517 = vpow2.f32 %v1316_v44  ;;  %v1312_v59 = vmul.f32 -1.442695, %v1128_v51  ;;  %v1108_v60 = vadd.f32 %v1107_v56, %v919_v50 }
 0x366   : > { %1519 = vpow2.f32 %v1313_v54  ;;  %v1131_v62 = vmax.f32 %v1113_v55, 0.0 }
 0x367   : > { %1521 = vpow2.f32 %v1312_v59  ;;  %v1130_v1 = vmax.f32 %v1108_v60, 0.0 }
 0x368   : > { %1523 = vrcp.f32 %v881_v53  ;;  %v1315_v3 = vmul.f32 -1.442695, %v1131_v62 }
 0x369   : > { %1525 = vrcp.f32 %v884_v58  ;;  %v1314_v6 = vmul.f32 -1.442695, %v1130_v1 }
 0x36a   : > { %1527 = vpow2.f32 %v1315_v3 }
 0x36b   : > { %1529 = vpow2.f32 %v1314_v6 }
 0x36c   : > { %v1512_v10 = vpop.eup %1511  ;;  %1531 = vrcp.f32 %v883_v2 }
 0x36d   : > { %v1514_v11 = vpop.eup %1513  ;;  %1533 = vrcp.f32 %v888_v5  ;;  %v1159_v12 = vadd.f32 1.0, %v1512_v10 }
 0x36e   : > { %v1516_v13 = vpop.eup %1515  ;;  %1535 = vrcp.f32 %v887_v8  ;;  %v1165_v14 = vadd.f32 1.0, %v1514_v11 }
 0x36f   : > { %v1518_v15 = vpop.eup %1517  ;;  %1537 = vrcp.f32 %v1159_v12  ;;  %v1158_v16 = vadd.f32 1.0, %v1516_v13 }
 0x370   : > { %v1520_v17 = vpop.eup %1519  ;;  %1539 = vrcp.f32 %v1165_v14  ;;  %v1164_v18 = vadd.f32 1.0, %v1518_v15 }
 0x371   : > { %v1522_v19 = vpop.eup %1521  ;;  %1541 = vrcp.f32 %v1158_v16  ;;  %v1161_v21 = vadd.f32 1.0, %v1520_v17 }
 0x372   : > { %v1524_v22 = vpop.eup %1523  ;;  %1543 = vrcp.f32 %v1164_v18  ;;  %v1160_v24 = vadd.f32 1.0, %v1522_v19 }
 0x373   : > { %v1526_v25 = vpop.eup %1525  ;;  %1545 = vrcp.f32 %v1161_v21 }
 0x374   : > { %v1528_v26 = vpop.eup %1527  ;;  %1547 = vrcp.f32 %v1160_v24 }
 0x375   : > { %v1530_v27 = vpop.eup %1529  ;;  %1549 = vrcp.f32 %v886_v20  ;;  %v1163_v28 = vadd.f32 1.0, %v1528_v26 }
 0x376   : > { %v1532_v29 = vpop.eup %1531  ;;  %1551 = vrcp.f32 %v885_v23  ;;  %v1162_v30 = vadd.f32 1.0, %v1530_v27 }
 0x377   : > { %v1534_v49 = vpop.eup %1533  ;;  %1553 = vrcp.f32 %v1163_v28 }
 0x378   : > { %v1536_v32 = vpop.eup %1535  ;;  %1555 = vrcp.f32 %v1162_v30 }
 0x379   : > { %v1538_v0 = vpop.eup %1537 }
 0x37a   : > { %v1540_v33 = vpop.eup %1539  ;;  %v1183_v34 = vadd.f32 %v1538_v0, %v1510_v9 }
 0x37b   : > { %v1542_v35 = vpop.eup %1541  ;;  %v1189_v31 = vadd.f32 %v1540_v33, %v1534_v49 }
 0x37c   : > { %v1544_v36 = vpop.eup %1543  ;;  %v1191_v37 = vmul.f32 0.5, %v1183_v34  ;;  %v1182_v38 = vadd.f32 %v1542_v35, %v1524_v22 }
 0x37d   : > { %v1546_v39 = vpop.eup %1545  ;;  %v1197_v40 = vmul.f32 0.5, %v1189_v31  ;;  %v1188_v41 = vadd.f32 %v1544_v36, %v1536_v32 }
 0x37e   : > { %v1548_v42 = vpop.eup %1547  ;;  %1199 = vst.msk [vmem:[%s360_s24 + $0x8] sm:$0xff] %vm365_vm0, %v1191_v37  ;;  %v1190_v43 = vmul.f32 0.5, %v1182_v38  ;;  %v1185_v44 = vadd.f32 %v1546_v39, %v1526_v25 }
 0x37f   : > { %v1550_v45 = vpop.eup %1549  ;;  %1205 = vst.msk [vmem:[%s360_s24 + $0x38] sm:$0xff] %vm365_vm0, %v1197_v40  ;;  %v1196_v46 = vmul.f32 0.5, %v1188_v41  ;;  %v1184_v47 = vadd.f32 %v1548_v42, %v1532_v29 }
 0x380   : > { %v1552_v48 = vpop.eup %1551  ;;  %1198 = vst.msk [vmem:[%s360_s24] sm:$0xff] %vm365_vm0, %v1190_v43  ;;  %v1193_v50 = vmul.f32 0.5, %v1185_v44 }
 0x381   : > { %v1554_v51 = vpop.eup %1553  ;;  %1204 = vst.msk [vmem:[%s360_s24 + $0x30] sm:$0xff] %vm365_vm0, %v1196_v46  ;;  %v1192_v52 = vmul.f32 0.5, %v1184_v47 }
 0x382   : > { %v1556_v53 = vpop.eup %1555  ;;  %1201 = vst.msk [vmem:[%s360_s24 + $0x18] sm:$0xff] %vm365_vm0, %v1193_v50  ;;  %v1187_v54 = vadd.f32 %v1554_v51, %v1550_v45 }
 0x383   : > { %1200 = vst.msk [vmem:[%s360_s24 + $0x10] sm:$0xff] %vm365_vm0, %v1192_v52  ;;  %v1186_v55 = vadd.f32 %v1556_v53, %v1552_v48 }
 0x384   : > { %v1195_v56 = vmul.f32 0.5, %v1187_v54 }
 0x385   : > { %v1194_v57 = vmul.f32 0.5, %v1186_v55 }
 0x386   : > { %1203 = vst.msk [vmem:[%s360_s24 + $0x28] sm:$0xff] %vm365_vm0, %v1195_v56 }
 0x387   : > { %1202 = vst.msk [vmem:[%s360_s24 + $0x20] sm:$0xff] %vm365_vm0, %v1194_v57 }
 0x388 PF: > { %s19_s11 = sadd.s32 1, %s1579_s11   ;;  %s1881_s30 = smov %s1575_s10 }
 0x389   : > { %p16_p5 = scmp.ge.s32.totalorder %s19_s11, 4   ;;  %s1882_s10 = smov %s1884_s12 }
 0x38b   :  { %18 = sbr.rel (!%p16_p5) target bundleno = 2 (0x2), region = 94 }

</bundles_post_ra>
